<compile_context>
chip_gen: v7x
topology: tpu7x:2x2x1
jax: 0.10.0
libtpu: 0.0.40
codegen_flags: <defaults>
</compile_context>

<pallas_src>
import functools

import jax
import jax.numpy as jnp
from jax import lax
from jax.experimental import pallas as pl
from jax.experimental.pallas import tpu as pltpu

_LANES = 128
_SUBLANES = 8
# 4096 rows x 128 lanes x f32 = 2 MiB per input block; 2 inputs x 2 pipeline
# buffers = 8 MiB VMEM -> fits every generation's scoped default (v5e 16 MiB,
# v6e/v7x 32 MiB).  Loss heads are tiny, so the grid is usually a single step.
_BLOCK_ROWS = 4096


# ------------------------------ fused kernel ---------------------------------

def _fused_loss_kernel(yp_ref, yt_ref, out_ref, acc_ref, *, tasks, block_rows):
    """One streaming pass over the concatenated (rows, 128) slab.

    `tasks` is a static (trace-time) tuple of segment descriptors:
      ("ccc", start, size, ncols, acc_base, out_base)  -> 10 acc slots, 2 outs
      ("mse", start, size, acc_base, out_base)         ->  1 acc slot,  1 out
      ("bce", start, size, acc_base, out_base)         ->  1 acc slot,  1 out
    """
    i = pl.program_id(0)

    @pl.when(i == 0)
    def _init():
        acc_ref[...] = jnp.zeros_like(acc_ref)

    yp = yp_ref[...].astype(jnp.float32)
    yt = yt_ref[...].astype(jnp.float32)

    # Flat element index of every lane in this block.  int32 is fine for loss
    # tensors (< 2^31 elements).
    row = lax.broadcasted_iota(jnp.int32, yp.shape, 0) + i * block_rows
    lane = lax.broadcasted_iota(jnp.int32, yp.shape, 1)
    idx = row * _LANES + lane

    def acc_add(slot, val, mask):
        # Select-mask AFTER computing `val` so NaN/Inf from other segments or
        # padding garbage never reaches the accumulator.
        v = jnp.where(mask, val, 0.0)
        # Layout-preserving reshape: pure VPU adds into a full (8,128) vreg
        # accumulator; cross-sublane/lane reduction is deferred to finalize.
        acc_ref[slot] += v.reshape(block_rows // _SUBLANES, _SUBLANES,
                                   _LANES).sum(axis=0)

    any_ccc = any(t[0] == "ccc" for t in tasks)
    any_mse = any(t[0] == "mse" for t in tasks)
    any_bce = any(t[0] == "bce" for t in tasks)

    if any_mse:
        diff = yp - yt
        mse_val = diff * diff
    if any_bce:
        # torch.nn.BCELoss clamps each log term at -100.
        logp = jnp.maximum(jnp.log(yp), jnp.float32(-100.0))
        log1mp = jnp.maximum(jnp.log(1.0 - yp), jnp.float32(-100.0))
        bce_val = -(yt * logp + (1.0 - yt) * log1mp)
    if any_ccc:
        tp = yt * yp
        tt = yt * yt
        pp = yp * yp

    for t in tasks:
        kind = t[0]
        if kind == "ccc":
            _, start, size, ncols, acc_base, _ = t
            in_seg = (idx >= start) & (idx < start + size)
            rel = idx - start
            for c in range(2):                 # column 0 = valence, 1 = arousal
                m = in_seg & ((rel % ncols) == c)
                base = acc_base + 5 * c
                acc_add(base + 0, yt, m)
                acc_add(base + 1, yp, m)
                acc_add(base + 2, tp, m)
                acc_add(base + 3, tt, m)
                acc_add(base + 4, pp, m)
        else:
            _, start, size, acc_base, _ = t
            m = (idx >= start) & (idx < start + size)
            acc_add(acc_base, mse_val if kind == "mse" else bce_val, m)

    @pl.when(i == pl.num_programs(0) - 1)
    def _finalize():
        for t in tasks:
            kind = t[0]
            if kind == "ccc":
                _, start, size, ncols, acc_base, out_base = t
                n = jnp.float32(size // ncols)
                for c in range(2):
                    base = acc_base + 5 * c
                    s_t = jnp.sum(acc_ref[base + 0])
                    s_p = jnp.sum(acc_ref[base + 1])
                    s_tp = jnp.sum(acc_ref[base + 2])
                    s_tt = jnp.sum(acc_ref[base + 3])
                    s_pp = jnp.sum(acc_ref[base + 4])
                    m_t = s_t / n
                    m_p = s_p / n
                    # mean((yt-m_t)*(yp-m_p)) == E[yt*yp] - m_t*m_p
                    cov = s_tp / n - m_t * m_p
                    # torch.var default is unbiased (divide by N-1); NaN for
                    # N == 1, matching torch.
                    v_t = (s_tt - n * m_t * m_t) / (n - 1.0)
                    v_p = (s_pp - n * m_p * m_p) / (n - 1.0)
                    denom = (v_t + v_p + (m_t - m_p) * (m_t - m_p)
                             + jnp.float32(1e-8))
                    out_ref[0, out_base + c] = (jnp.float32(1.0)
                                                - 2.0 * cov / denom)
            else:
                _, start, size, acc_base, out_base = t
                out_ref[0, out_base] = (jnp.sum(acc_ref[acc_base])
                                        / jnp.float32(size))


# ------------------------------ host wrapper ---------------------------------

def fused_multi_task_losses(heads):
    """Compute every head loss in a single pallas_call.

    heads: ordered list of (kind, y_pred, y_true) with kind in
           {"ccc2", "mse", "bce"}.  "ccc2" applies ConcordanceCCC to columns
           0 and 1 of a 2-D (B, C) array (one pass, per-column moments).

    Returns (losses, out_slots): losses is a (n_losses,) f32 array; out_slots
    gives, per head, the tuple of indices into `losses` that belong to it.
    """
    preds, tgts, tasks, out_slots = [], [], [], []
    offset = 0
    n_acc = 0
    n_out = 0
    for kind, yp, yt in heads:
        assert yp.shape == yt.shape, (yp.shape, yt.shape)
        size = int(yp.size)
        preds.append(jnp.ravel(yp))
        tgts.append(jnp.ravel(yt))
        if kind == "ccc2":
            assert yp.ndim == 2 and yp.shape[-1] >= 2, yp.shape
            ncols = int(yp.shape[-1])
            tasks.append(("ccc", offset, size, ncols, n_acc, n_out))
            out_slots.append((n_out, n_out + 1))
            n_acc += 10
            n_out += 2
        elif kind in ("mse", "bce"):
            tasks.append((kind, offset, size, n_acc, n_out))
            out_slots.append((n_out,))
            n_acc += 1
            n_out += 1
        else:
            raise ValueError(f"unknown head kind: {kind}")
        offset += size

    pred_flat = jnp.concatenate(preds) if len(preds) > 1 else preds[0]
    tgt_flat = jnp.concatenate(tgts) if len(tgts) > 1 else tgts[0]

    # Pad only the ragged tail up to one layout tile (accounting for sub-32-bit
    # sublane packing), identically for pred and target so segment indices in
    # the two slabs line up.  Padding falls outside every segment, so it never
    # reaches an accumulator.
    n_total = offset
    min_itemsize = min(jnp.dtype(pred_flat.dtype).itemsize,
                       jnp.dtype(tgt_flat.dtype).itemsize)
    pack = max(1, 4 // min_itemsize)
    unit = _SUBLANES * pack * _LANES
    padded = pl.cdiv(n_total, unit) * unit
    rows = padded // _LANES

    def to_slab(flat):
        if flat.size != padded:
            flat = jnp.pad(flat, (0, padded - flat.size))
        return flat.reshape(rows, _LANES)

    yp2d = to_slab(pred_flat)
    yt2d = to_slab(tgt_flat)

    block_rows = min(_BLOCK_ROWS, rows)
    grid = (pl.cdiv(rows, block_rows),)

    kernel = functools.partial(_fused_loss_kernel, tasks=tuple(tasks),
                               block_rows=block_rows)
    out = pl.pallas_call(
        kernel,
        out_shape=jax.ShapeDtypeStruct((1, n_out), jnp.float32),
        grid_spec=pltpu.PrefetchScalarGridSpec(
            num_scalar_prefetch=0,
            grid=grid,
            in_specs=[
                pl.BlockSpec((block_rows, _LANES), lambda i: (i, 0)),
                pl.BlockSpec((block_rows, _LANES), lambda i: (i, 0)),
            ],
            out_specs=pl.BlockSpec((1, n_out), lambda i: (0, 0),
                                   memory_space=pltpu.SMEM),
            scratch_shapes=[
                pltpu.VMEM((n_acc, _SUBLANES, _LANES), jnp.float32)],
        ),
        compiler_params=pltpu.CompilerParams(
            dimension_semantics=("arbitrary",)),
    )(yp2d, yt2d)
    return out[0], out_slots


class MultiTaskLoss:
    """Pallas TPU port of the PyTorch MultiTaskLoss forward pass.

    All present heads are reduced in a SINGLE fused Pallas kernel launch; the
    final lambda-weighted sum happens in plain JAX.

    Note: the PyTorch module also constructs a CrossEntropyLoss, but forward()
    never uses it, so it is intentionally not implemented here.
    """

    def __init__(self, lambda_affective=1.0, lambda_pathology=1.0,
                 lambda_social=1.0, lambda_cognitive=1.0,
                 lambda_personality=1.0):
        self.lambda_affective = lambda_affective
        self.lambda_pathology = lambda_pathology
        self.lambda_social = lambda_social
        self.lambda_cognitive = lambda_cognitive
        self.lambda_personality = lambda_personality

    def __call__(self, outputs, targets):
        heads, lambdas = [], []
        if "affective" in outputs:
            heads.append(("ccc2", outputs["affective"], targets["affective"]))
            lambdas.append(self.lambda_affective)
        if "pathology" in outputs:
            heads.append(("mse", outputs["pathology"], targets["pathology"]))
            lambdas.append(self.lambda_pathology)
        if "social" in outputs:
            heads.append(("bce", outputs["social"], targets["social"]))
            lambdas.append(self.lambda_social)
        if "cognitive" in outputs:
            heads.append(("mse", outputs["cognitive"], targets["cognitive"]))
            lambdas.append(self.lambda_cognitive)
        if "personality" in outputs:
            heads.append(("bce", outputs["personality"],
                          targets["personality"]))
            lambdas.append(self.lambda_personality)

        if not heads:
            return jnp.float32(0.0)

        losses, out_slots = fused_multi_task_losses(heads)
        total = jnp.float32(0.0)
        for lam, slots in zip(lambdas, out_slots):
            head_loss = losses[slots[0]]
            for s in slots[1:]:               # ccc2: valence + arousal
                head_loss = head_loss + losses[s]
            total = total + lam * head_loss
        return total


# ------------------------------ pure-JAX reference ----------------------------

def _ref_ccc(y_pred, y_true):
    yp = y_pred.astype(jnp.float32).ravel()
    yt = y_true.astype(jnp.float32).ravel()
    m_t = jnp.mean(yt)
    m_p = jnp.mean(yp)
    cov = jnp.mean((yt - m_t) * (yp - m_p))
    v_t = jnp.var(yt, ddof=1)
    v_p = jnp.var(yp, ddof=1)
    ccc = 2 * cov / (v_t + v_p + (m_t - m_p) ** 2 + 1e-8)
    return 1 - ccc


def _ref_mse(a, b):
    return jnp.mean((a.astype(jnp.float32) - b.astype(jnp.float32)) ** 2)


def _ref_bce(p, t):
    p = p.astype(jnp.float32)
    t = t.astype(jnp.float32)
    logp = jnp.maximum(jnp.log(p), -100.0)
    log1mp = jnp.maximum(jnp.log(1.0 - p), -100.0)
    return jnp.mean(-(t * logp + (1.0 - t) * log1mp))


def _reference_multi_task_loss(outputs, targets):
    total = 0.0
    total += _ref_ccc(outputs["affective"][:, 0], targets["affective"][:, 0])
    total += _ref_ccc(outputs["affective"][:, 1], targets["affective"][:, 1])
    total += _ref_mse(outputs["pathology"], targets["pathology"])
    total += _ref_bce(outputs["social"], targets["social"])
    total += _ref_mse(outputs["cognitive"], targets["cognitive"])
    total += _ref_bce(outputs["personality"], targets["personality"])
    return total


if __name__ == "__main__":
    key = jax.random.PRNGKey(0)
    keys = jax.random.split(key, 10)
    B = 8

    outputs = {
        "affective": jax.random.normal(keys[0], (B, 2), dtype=jnp.float32),
        "pathology": jax.random.normal(keys[1], (B, 4), dtype=jnp.float32),
        "social": jax.nn.sigmoid(
            jax.random.normal(keys[2], (B, 3), dtype=jnp.float32)),
        "cognitive": jax.random.normal(keys[3], (B, 4), dtype=jnp.float32),
        "personality": jax.nn.sigmoid(
            jax.random.normal(keys[4], (B, 5), dtype=jnp.float32)),
    }
    targets = {
        "affective": jax.random.normal(keys[5], (B, 2), dtype=jnp.float32),
        "pathology": jax.random.normal(keys[6], (B, 4), dtype=jnp.float32),
        "social": jax.random.bernoulli(keys[7], 0.5, (B, 3)).astype(jnp.float32),
        "cognitive": jax.random.normal(keys[8], (B, 4), dtype=jnp.float32),
        "personality": jax.random.bernoulli(keys[9], 0.5,
                                            (B, 5)).astype(jnp.float32),
    }

    loss_fn = MultiTaskLoss()
    loss = loss_fn(outputs, targets)
    jax.block_until_ready(loss)

    ref = _reference_multi_task_loss(outputs, targets)
    assert jnp.allclose(loss, ref, rtol=1e-5, atol=1e-5), (loss, ref)

    print("KERNEL_OK")
</pallas_src>

<mosaic_0001>
module attributes {stable_mosaic.version = 11 : i64} {
  func.func @_fused_loss_kernel(%arg0: i32, %arg1: memref<8x128xf32, #tpu.memory_space<vmem>>, %arg2: memref<8x128xf32, #tpu.memory_space<vmem>>, %arg3: memref<1x6xf32, #tpu.memory_space<smem>>, %arg4: memref<14x8x128xf32, #tpu.memory_space<vmem>>) attributes {dimension_semantics = [#tpu.dimension_semantics<arbitrary>], iteration_bounds = array<i64: 1>, scalar_prefetch = 0 : i64, scratch_operands = 1 : i64, tpu.core_type = #tpu.core_type<tc>, window_params = [{transform_indices = @transform_0, window_bounds = array<i64: 8, 128>}, {transform_indices = @transform_1, window_bounds = array<i64: 8, 128>}, {transform_indices = @transform_2, window_bounds = array<i64: 1, 6>}]} {
    %c0_i32 = arith.constant 0 : i32
    %0 = arith.cmpi eq, %arg0, %c0_i32 : i32
    %1 = arith.extui %0 : i1 to i32
    %c0_i32_0 = arith.constant 0 : i32
    %2 = arith.cmpi ne, %1, %c0_i32_0 : i32
    scf.if %2 {
      %cst_127 = arith.constant 0.000000e+00 : f32
      %241 = vector.broadcast %cst_127 : f32 to vector<14x8x128xf32>
      %c0_128 = arith.constant 0 : index
      %c0_129 = arith.constant 0 : index
      %c0_130 = arith.constant 0 : index
      %242 = vector.load %arg4[%c0_128, %c0_129, %c0_130] : memref<14x8x128xf32, #tpu.memory_space<vmem>>, vector<14x8x128xf32>
      tpu.vector_store %arg4[%c0_128, %c0_129, %c0_130], %241 {strides = array<i32>} : memref<14x8x128xf32, #tpu.memory_space<vmem>>, vector<14x8x128xf32>,
    } else {
    }
    %c0 = arith.constant 0 : index
    %c0_1 = arith.constant 0 : index
    %3 = vector.load %arg1[%c0, %c0_1] : memref<8x128xf32, #tpu.memory_space<vmem>>, vector<8x128xf32>
    %c0_2 = arith.constant 0 : index
    %c0_3 = arith.constant 0 : index
    %4 = vector.load %arg2[%c0_2, %c0_3] : memref<8x128xf32, #tpu.memory_space<vmem>>, vector<8x128xf32>
    %5 = tpu.iota {dimensions = array<i32: 0>} : vector<8x128xi32>
    %c8_i32 = arith.constant 8 : i32
    %6 = arith.muli %arg0, %c8_i32 : i32
    %7 = vector.broadcast %6 : i32 to vector<8x128xi32>
    %8 = arith.addi %5, %7 : vector<8x128xi32>
    %9 = tpu.iota {dimensions = array<i32: 1>} : vector<8x128xi32>
    %c128_i32 = arith.constant 128 : i32
    %10 = vector.broadcast %c128_i32 : i32 to vector<8x128xi32>
    %11 = arith.muli %8, %10 : vector<8x128xi32>
    %12 = arith.addi %11, %9 : vector<8x128xi32>
    %13 = arith.subf %3, %4 : vector<8x128xf32>
    %14 = arith.mulf %13, %13 : vector<8x128xf32>
    %15 = math.log %3 : vector<8x128xf32>
    %cst = arith.constant -1.000000e+02 : f32
    %16 = vector.broadcast %cst : f32 to vector<8x128xf32>
    %17 = arith.maximumf %15, %16 : vector<8x128xf32>
    %cst_4 = arith.constant 1.000000e+00 : f32
    %18 = vector.broadcast %cst_4 : f32 to vector<8x128xf32>
    %19 = arith.subf %18, %3 : vector<8x128xf32>
    %20 = math.log %19 : vector<8x128xf32>
    %cst_5 = arith.constant -1.000000e+02 : f32
    %21 = vector.broadcast %cst_5 : f32 to vector<8x128xf32>
    %22 = arith.maximumf %20, %21 : vector<8x128xf32>
    %23 = arith.mulf %4, %17 : vector<8x128xf32>
    %cst_6 = arith.constant 1.000000e+00 : f32
    %24 = vector.broadcast %cst_6 : f32 to vector<8x128xf32>
    %25 = arith.subf %24, %4 : vector<8x128xf32>
    %26 = arith.mulf %25, %22 : vector<8x128xf32>
    %27 = arith.addf %23, %26 : vector<8x128xf32>
    %cst_7 = arith.constant 0.000000e+00 : f32
    %28 = vector.broadcast %cst_7 : f32 to vector<8x128xf32>
    %29 = arith.subf %28, %27 : vector<8x128xf32>
    %30 = arith.mulf %4, %3 : vector<8x128xf32>
    %31 = arith.mulf %4, %4 : vector<8x128xf32>
    %32 = arith.mulf %3, %3 : vector<8x128xf32>
    %c0_i32_8 = arith.constant 0 : i32
    %33 = vector.broadcast %c0_i32_8 : i32 to vector<8x128xi32>
    %34 = arith.cmpi sge, %12, %33 : vector<8x128xi32>
    %c16_i32 = arith.constant 16 : i32
    %35 = vector.broadcast %c16_i32 : i32 to vector<8x128xi32>
    %36 = arith.cmpi slt, %12, %35 : vector<8x128xi32>
    %37 = arith.andi %34, %36 : vector<8x128xi1>
    %c0_i32_9 = arith.constant 0 : i32
    %38 = vector.broadcast %c0_i32_9 : i32 to vector<8x128xi32>
    %39 = arith.subi %12, %38 : vector<8x128xi32>
    %c2_i32 = arith.constant 2 : i32
    %c0_i32_10 = arith.constant 0 : i32
    %40 = arith.cmpi eq, %c2_i32, %c0_i32_10 : i32
    %c1_i32 = arith.constant 1 : i32
    %41 = arith.select %40, %c1_i32, %c2_i32 : i32
    %42 = vector.broadcast %41 : i32 to vector<8x128xi32>
    %43 = arith.remsi %39, %42 : vector<8x128xi32>
    %c0_i32_11 = arith.constant 0 : i32
    %44 = vector.broadcast %c0_i32_11 : i32 to vector<8x128xi32>
    %45 = arith.cmpi ne, %43, %44 : vector<8x128xi32>
    %c0_i32_12 = arith.constant 0 : i32
    %46 = vector.broadcast %c0_i32_12 : i32 to vector<8x128xi32>
    %47 = arith.cmpi slt, %43, %46 : vector<8x128xi32>
    %c0_i32_13 = arith.constant 0 : i32
    %48 = arith.cmpi slt, %41, %c0_i32_13 : i32
    %49 = vector.broadcast %48 : i1 to vector<8x128xi1>
    %50 = vector.broadcast %49 : vector<8x128xi1> to vector<8x128xi1>
    %51 = arith.xori %47, %50 : vector<8x128xi1>
    %52 = arith.andi %51, %45 : vector<8x128xi1>
    %53 = vector.broadcast %41 : i32 to vector<8x128xi32>
    %54 = arith.addi %43, %53 : vector<8x128xi32>
    %55 = arith.select %52, %54, %43 : vector<8x128xi1>, vector<8x128xi32>
    %c0_i32_14 = arith.constant 0 : i32
    %56 = vector.broadcast %c0_i32_14 : i32 to vector<8x128xi32>
    %57 = arith.cmpi eq, %55, %56 : vector<8x128xi32>
    %58 = arith.andi %37, %57 : vector<8x128xi1>
    %cst_15 = arith.constant 0.000000e+00 : f32
    %59 = vector.broadcast %cst_15 : f32 to vector<8x128xf32>
    %60 = arith.select %58, %4, %59 : vector<8x128xi1>, vector<8x128xf32>
    %c0_16 = arith.constant 0 : index
    %c0_17 = arith.constant 0 : index
    %c0_18 = arith.constant 0 : index
    %61 = vector.load %arg4[%c0_16, %c0_17, %c0_18] : memref<14x8x128xf32, #tpu.memory_space<vmem>>, vector<1x8x128xf32>
    %62 = vector.shape_cast %61 : vector<1x8x128xf32> to vector<8x128xf32>
    %63 = vector.shape_cast %60 : vector<8x128xf32> to vector<1x8x128xf32>
    %cst_19 = arith.constant dense<0.000000e+00> : vector<8x128xf32>
    %64 = vector.multi_reduction <add>, %63, %cst_19 [0] : vector<1x8x128xf32> to vector<8x128xf32>
    %65 = arith.addf %62, %64 : vector<8x128xf32>
    %c0_20 = arith.constant 0 : index
    %c0_21 = arith.constant 0 : index
    %c0_22 = arith.constant 0 : index
    %66 = vector.load %arg4[%c0_20, %c0_21, %c0_22] : memref<14x8x128xf32, #tpu.memory_space<vmem>>, vector<1x8x128xf32>
    %67 = vector.shape_cast %66 : vector<1x8x128xf32> to vector<8x128xf32>
    %68 = vector.shape_cast %65 : vector<8x128xf32> to vector<1x8x128xf32>
    tpu.vector_store %arg4[%c0_20, %c0_21, %c0_22], %68 {strides = array<i32>} : memref<14x8x128xf32, #tpu.memory_space<vmem>>, vector<1x8x128xf32>,
    %cst_23 = arith.constant 0.000000e+00 : f32
    %69 = vector.broadcast %cst_23 : f32 to vector<8x128xf32>
    %70 = arith.select %58, %3, %69 : vector<8x128xi1>, vector<8x128xf32>
    %c1 = arith.constant 1 : index
    %c0_24 = arith.constant 0 : index
    %c0_25 = arith.constant 0 : index
    %71 = vector.load %arg4[%c1, %c0_24, %c0_25] : memref<14x8x128xf32, #tpu.memory_space<vmem>>, vector<1x8x128xf32>
    %72 = vector.shape_cast %71 : vector<1x8x128xf32> to vector<8x128xf32>
    %73 = vector.shape_cast %70 : vector<8x128xf32> to vector<1x8x128xf32>
    %cst_26 = arith.constant dense<0.000000e+00> : vector<8x128xf32>
    %74 = vector.multi_reduction <add>, %73, %cst_26 [0] : vector<1x8x128xf32> to vector<8x128xf32>
    %75 = arith.addf %72, %74 : vector<8x128xf32>
    %c1_27 = arith.constant 1 : index
    %c0_28 = arith.constant 0 : index
    %c0_29 = arith.constant 0 : index
    %76 = vector.load %arg4[%c1_27, %c0_28, %c0_29] : memref<14x8x128xf32, #tpu.memory_space<vmem>>, vector<1x8x128xf32>
    %77 = vector.shape_cast %76 : vector<1x8x128xf32> to vector<8x128xf32>
    %78 = vector.shape_cast %75 : vector<8x128xf32> to vector<1x8x128xf32>
    tpu.vector_store %arg4[%c1_27, %c0_28, %c0_29], %78 {strides = array<i32>} : memref<14x8x128xf32, #tpu.memory_space<vmem>>, vector<1x8x128xf32>,
    %cst_30 = arith.constant 0.000000e+00 : f32
    %79 = vector.broadcast %cst_30 : f32 to vector<8x128xf32>
    %80 = arith.select %58, %30, %79 : vector<8x128xi1>, vector<8x128xf32>
    %c2 = arith.constant 2 : index
    %c0_31 = arith.constant 0 : index
    %c0_32 = arith.constant 0 : index
    %81 = vector.load %arg4[%c2, %c0_31, %c0_32] : memref<14x8x128xf32, #tpu.memory_space<vmem>>, vector<1x8x128xf32>
    %82 = vector.shape_cast %81 : vector<1x8x128xf32> to vector<8x128xf32>
    %83 = vector.shape_cast %80 : vector<8x128xf32> to vector<1x8x128xf32>
    %cst_33 = arith.constant dense<0.000000e+00> : vector<8x128xf32>
    %84 = vector.multi_reduction <add>, %83, %cst_33 [0] : vector<1x8x128xf32> to vector<8x128xf32>
    %85 = arith.addf %82, %84 : vector<8x128xf32>
    %c2_34 = arith.constant 2 : index
    %c0_35 = arith.constant 0 : index
    %c0_36 = arith.constant 0 : index
    %86 = vector.load %arg4[%c2_34, %c0_35, %c0_36] : memref<14x8x128xf32, #tpu.memory_space<vmem>>, vector<1x8x128xf32>
    %87 = vector.shape_cast %86 : vector<1x8x128xf32> to vector<8x128xf32>
    %88 = vector.shape_cast %85 : vector<8x128xf32> to vector<1x8x128xf32>
    tpu.vector_store %arg4[%c2_34, %c0_35, %c0_36], %88 {strides = array<i32>} : memref<14x8x128xf32, #tpu.memory_space<vmem>>, vector<1x8x128xf32>,
    %cst_37 = arith.constant 0.000000e+00 : f32
    %89 = vector.broadcast %cst_37 : f32 to vector<8x128xf32>
    %90 = arith.select %58, %31, %89 : vector<8x128xi1>, vector<8x128xf32>
    %c3 = arith.constant 3 : index
    %c0_38 = arith.constant 0 : index
    %c0_39 = arith.constant 0 : index
    %91 = vector.load %arg4[%c3, %c0_38, %c0_39] : memref<14x8x128xf32, #tpu.memory_space<vmem>>, vector<1x8x128xf32>
    %92 = vector.shape_cast %91 : vector<1x8x128xf32> to vector<8x128xf32>
    %93 = vector.shape_cast %90 : vector<8x128xf32> to vector<1x8x128xf32>
    %cst_40 = arith.constant dense<0.000000e+00> : vector<8x128xf32>
    %94 = vector.multi_reduction <add>, %93, %cst_40 [0] : vector<1x8x128xf32> to vector<8x128xf32>
    %95 = arith.addf %92, %94 : vector<8x128xf32>
    %c3_41 = arith.constant 3 : index
    %c0_42 = arith.constant 0 : index
    %c0_43 = arith.constant 0 : index
    %96 = vector.load %arg4[%c3_41, %c0_42, %c0_43] : memref<14x8x128xf32, #tpu.memory_space<vmem>>, vector<1x8x128xf32>
    %97 = vector.shape_cast %96 : vector<1x8x128xf32> to vector<8x128xf32>
    %98 = vector.shape_cast %95 : vector<8x128xf32> to vector<1x8x128xf32>
    tpu.vector_store %arg4[%c3_41, %c0_42, %c0_43], %98 {strides = array<i32>} : memref<14x8x128xf32, #tpu.memory_space<vmem>>, vector<1x8x128xf32>,
    %cst_44 = arith.constant 0.000000e+00 : f32
    %99 = vector.broadcast %cst_44 : f32 to vector<8x128xf32>
    %100 = arith.select %58, %32, %99 : vector<8x128xi1>, vector<8x128xf32>
    %c4 = arith.constant 4 : index
    %c0_45 = arith.constant 0 : index
    %c0_46 = arith.constant 0 : index
    %101 = vector.load %arg4[%c4, %c0_45, %c0_46] : memref<14x8x128xf32, #tpu.memory_space<vmem>>, vector<1x8x128xf32>
    %102 = vector.shape_cast %101 : vector<1x8x128xf32> to vector<8x128xf32>
    %103 = vector.shape_cast %100 : vector<8x128xf32> to vector<1x8x128xf32>
    %cst_47 = arith.constant dense<0.000000e+00> : vector<8x128xf32>
    %104 = vector.multi_reduction <add>, %103, %cst_47 [0] : vector<1x8x128xf32> to vector<8x128xf32>
    %105 = arith.addf %102, %104 : vector<8x128xf32>
    %c4_48 = arith.constant 4 : index
    %c0_49 = arith.constant 0 : index
    %c0_50 = arith.constant 0 : index
    %106 = vector.load %arg4[%c4_48, %c0_49, %c0_50] : memref<14x8x128xf32, #tpu.memory_space<vmem>>, vector<1x8x128xf32>
    %107 = vector.shape_cast %106 : vector<1x8x128xf32> to vector<8x128xf32>
    %108 = vector.shape_cast %105 : vector<8x128xf32> to vector<1x8x128xf32>
    tpu.vector_store %arg4[%c4_48, %c0_49, %c0_50], %108 {strides = array<i32>} : memref<14x8x128xf32, #tpu.memory_space<vmem>>, vector<1x8x128xf32>,
    %c2_i32_51 = arith.constant 2 : i32
    %c0_i32_52 = arith.constant 0 : i32
    %109 = arith.cmpi eq, %c2_i32_51, %c0_i32_52 : i32
    %c1_i32_53 = arith.constant 1 : i32
    %110 = arith.select %109, %c1_i32_53, %c2_i32_51 : i32
    %111 = vector.broadcast %110 : i32 to vector<8x128xi32>
    %112 = arith.remsi %39, %111 : vector<8x128xi32>
    %c0_i32_54 = arith.constant 0 : i32
    %113 = vector.broadcast %c0_i32_54 : i32 to vector<8x128xi32>
    %114 = arith.cmpi ne, %112, %113 : vector<8x128xi32>
    %c0_i32_55 = arith.constant 0 : i32
    %115 = vector.broadcast %c0_i32_55 : i32 to vector<8x128xi32>
    %116 = arith.cmpi slt, %112, %115 : vector<8x128xi32>
    %c0_i32_56 = arith.constant 0 : i32
    %117 = arith.cmpi slt, %110, %c0_i32_56 : i32
    %118 = vector.broadcast %117 : i1 to vector<8x128xi1>
    %119 = vector.broadcast %118 : vector<8x128xi1> to vector<8x128xi1>
    %120 = arith.xori %116, %119 : vector<8x128xi1>
    %121 = arith.andi %120, %114 : vector<8x128xi1>
    %122 = vector.broadcast %110 : i32 to vector<8x128xi32>
    %123 = arith.addi %112, %122 : vector<8x128xi32>
    %124 = arith.select %121, %123, %112 : vector<8x128xi1>, vector<8x128xi32>
    %c1_i32_57 = arith.constant 1 : i32
    %125 = vector.broadcast %c1_i32_57 : i32 to vector<8x128xi32>
    %126 = arith.cmpi eq, %124, %125 : vector<8x128xi32>
    %127 = arith.andi %37, %126 : vector<8x128xi1>
    %cst_58 = arith.constant 0.000000e+00 : f32
    %128 = vector.broadcast %cst_58 : f32 to vector<8x128xf32>
    %129 = arith.select %127, %4, %128 : vector<8x128xi1>, vector<8x128xf32>
    %c5 = arith.constant 5 : index
    %c0_59 = arith.constant 0 : index
    %c0_60 = arith.constant 0 : index
    %130 = vector.load %arg4[%c5, %c0_59, %c0_60] : memref<14x8x128xf32, #tpu.memory_space<vmem>>, vector<1x8x128xf32>
    %131 = vector.shape_cast %130 : vector<1x8x128xf32> to vector<8x128xf32>
    %132 = vector.shape_cast %129 : vector<8x128xf32> to vector<1x8x128xf32>
    %cst_61 = arith.constant dense<0.000000e+00> : vector<8x128xf32>
    %133 = vector.multi_reduction <add>, %132, %cst_61 [0] : vector<1x8x128xf32> to vector<8x128xf32>
    %134 = arith.addf %131, %133 : vector<8x128xf32>
    %c5_62 = arith.constant 5 : index
    %c0_63 = arith.constant 0 : index
    %c0_64 = arith.constant 0 : index
    %135 = vector.load %arg4[%c5_62, %c0_63, %c0_64] : memref<14x8x128xf32, #tpu.memory_space<vmem>>, vector<1x8x128xf32>
    %136 = vector.shape_cast %135 : vector<1x8x128xf32> to vector<8x128xf32>
    %137 = vector.shape_cast %134 : vector<8x128xf32> to vector<1x8x128xf32>
    tpu.vector_store %arg4[%c5_62, %c0_63, %c0_64], %137 {strides = array<i32>} : memref<14x8x128xf32, #tpu.memory_space<vmem>>, vector<1x8x128xf32>,
    %cst_65 = arith.constant 0.000000e+00 : f32
    %138 = vector.broadcast %cst_65 : f32 to vector<8x128xf32>
    %139 = arith.select %127, %3, %138 : vector<8x128xi1>, vector<8x128xf32>
    %c6 = arith.constant 6 : index
    %c0_66 = arith.constant 0 : index
    %c0_67 = arith.constant 0 : index
    %140 = vector.load %arg4[%c6, %c0_66, %c0_67] : memref<14x8x128xf32, #tpu.memory_space<vmem>>, vector<1x8x128xf32>
    %141 = vector.shape_cast %140 : vector<1x8x128xf32> to vector<8x128xf32>
    %142 = vector.shape_cast %139 : vector<8x128xf32> to vector<1x8x128xf32>
    %cst_68 = arith.constant dense<0.000000e+00> : vector<8x128xf32>
    %143 = vector.multi_reduction <add>, %142, %cst_68 [0] : vector<1x8x128xf32> to vector<8x128xf32>
    %144 = arith.addf %141, %143 : vector<8x128xf32>
    %c6_69 = arith.constant 6 : index
    %c0_70 = arith.constant 0 : index
    %c0_71 = arith.constant 0 : index
    %145 = vector.load %arg4[%c6_69, %c0_70, %c0_71] : memref<14x8x128xf32, #tpu.memory_space<vmem>>, vector<1x8x128xf32>
    %146 = vector.shape_cast %145 : vector<1x8x128xf32> to vector<8x128xf32>
    %147 = vector.shape_cast %144 : vector<8x128xf32> to vector<1x8x128xf32>
    tpu.vector_store %arg4[%c6_69, %c0_70, %c0_71], %147 {strides = array<i32>} : memref<14x8x128xf32, #tpu.memory_space<vmem>>, vector<1x8x128xf32>,
    %cst_72 = arith.constant 0.000000e+00 : f32
    %148 = vector.broadcast %cst_72 : f32 to vector<8x128xf32>
    %149 = arith.select %127, %30, %148 : vector<8x128xi1>, vector<8x128xf32>
    %c7 = arith.constant 7 : index
    %c0_73 = arith.constant 0 : index
    %c0_74 = arith.constant 0 : index
    %150 = vector.load %arg4[%c7, %c0_73, %c0_74] : memref<14x8x128xf32, #tpu.memory_space<vmem>>, vector<1x8x128xf32>
    %151 = vector.shape_cast %150 : vector<1x8x128xf32> to vector<8x128xf32>
    %152 = vector.shape_cast %149 : vector<8x128xf32> to vector<1x8x128xf32>
    %cst_75 = arith.constant dense<0.000000e+00> : vector<8x128xf32>
    %153 = vector.multi_reduction <add>, %152, %cst_75 [0] : vector<1x8x128xf32> to vector<8x128xf32>
    %154 = arith.addf %151, %153 : vector<8x128xf32>
    %c7_76 = arith.constant 7 : index
    %c0_77 = arith.constant 0 : index
    %c0_78 = arith.constant 0 : index
    %155 = vector.load %arg4[%c7_76, %c0_77, %c0_78] : memref<14x8x128xf32, #tpu.memory_space<vmem>>, vector<1x8x128xf32>
    %156 = vector.shape_cast %155 : vector<1x8x128xf32> to vector<8x128xf32>
    %157 = vector.shape_cast %154 : vector<8x128xf32> to vector<1x8x128xf32>
    tpu.vector_store %arg4[%c7_76, %c0_77, %c0_78], %157 {strides = array<i32>} : memref<14x8x128xf32, #tpu.memory_space<vmem>>, vector<1x8x128xf32>,
    %cst_79 = arith.constant 0.000000e+00 : f32
    %158 = vector.broadcast %cst_79 : f32 to vector<8x128xf32>
    %159 = arith.select %127, %31, %158 : vector<8x128xi1>, vector<8x128xf32>
    %c8 = arith.constant 8 : index
    %c0_80 = arith.constant 0 : index
    %c0_81 = arith.constant 0 : index
    %160 = vector.load %arg4[%c8, %c0_80, %c0_81] : memref<14x8x128xf32, #tpu.memory_space<vmem>>, vector<1x8x128xf32>
    %161 = vector.shape_cast %160 : vector<1x8x128xf32> to vector<8x128xf32>
    %162 = vector.shape_cast %159 : vector<8x128xf32> to vector<1x8x128xf32>
    %cst_82 = arith.constant dense<0.000000e+00> : vector<8x128xf32>
    %163 = vector.multi_reduction <add>, %162, %cst_82 [0] : vector<1x8x128xf32> to vector<8x128xf32>
    %164 = arith.addf %161, %163 : vector<8x128xf32>
    %c8_83 = arith.constant 8 : index
    %c0_84 = arith.constant 0 : index
    %c0_85 = arith.constant 0 : index
    %165 = vector.load %arg4[%c8_83, %c0_84, %c0_85] : memref<14x8x128xf32, #tpu.memory_space<vmem>>, vector<1x8x128xf32>
    %166 = vector.shape_cast %165 : vector<1x8x128xf32> to vector<8x128xf32>
    %167 = vector.shape_cast %164 : vector<8x128xf32> to vector<1x8x128xf32>
    tpu.vector_store %arg4[%c8_83, %c0_84, %c0_85], %167 {strides = array<i32>} : memref<14x8x128xf32, #tpu.memory_space<vmem>>, vector<1x8x128xf32>,
    %cst_86 = arith.constant 0.000000e+00 : f32
    %168 = vector.broadcast %cst_86 : f32 to vector<8x128xf32>
    %169 = arith.select %127, %32, %168 : vector<8x128xi1>, vector<8x128xf32>
    %c9 = arith.constant 9 : index
    %c0_87 = arith.constant 0 : index
    %c0_88 = arith.constant 0 : index
    %170 = vector.load %arg4[%c9, %c0_87, %c0_88] : memref<14x8x128xf32, #tpu.memory_space<vmem>>, vector<1x8x128xf32>
    %171 = vector.shape_cast %170 : vector<1x8x128xf32> to vector<8x128xf32>
    %172 = vector.shape_cast %169 : vector<8x128xf32> to vector<1x8x128xf32>
    %cst_89 = arith.constant dense<0.000000e+00> : vector<8x128xf32>
    %173 = vector.multi_reduction <add>, %172, %cst_89 [0] : vector<1x8x128xf32> to vector<8x128xf32>
    %174 = arith.addf %171, %173 : vector<8x128xf32>
    %c9_90 = arith.constant 9 : index
    %c0_91 = arith.constant 0 : index
    %c0_92 = arith.constant 0 : index
    %175 = vector.load %arg4[%c9_90, %c0_91, %c0_92] : memref<14x8x128xf32, #tpu.memory_space<vmem>>, vector<1x8x128xf32>
    %176 = vector.shape_cast %175 : vector<1x8x128xf32> to vector<8x128xf32>
    %177 = vector.shape_cast %174 : vector<8x128xf32> to vector<1x8x128xf32>
    tpu.vector_store %arg4[%c9_90, %c0_91, %c0_92], %177 {strides = array<i32>} : memref<14x8x128xf32, #tpu.memory_space<vmem>>, vector<1x8x128xf32>,
    %c16_i32_93 = arith.constant 16 : i32
    %178 = vector.broadcast %c16_i32_93 : i32 to vector<8x128xi32>
    %179 = arith.cmpi sge, %12, %178 : vector<8x128xi32>
    %c48_i32 = arith.constant 48 : i32
    %180 = vector.broadcast %c48_i32 : i32 to vector<8x128xi32>
    %181 = arith.cmpi slt, %12, %180 : vector<8x128xi32>
    %182 = arith.andi %179, %181 : vector<8x128xi1>
    %cst_94 = arith.constant 0.000000e+00 : f32
    %183 = vector.broadcast %cst_94 : f32 to vector<8x128xf32>
    %184 = arith.select %182, %14, %183 : vector<8x128xi1>, vector<8x128xf32>
    %c10 = arith.constant 10 : index
    %c0_95 = arith.constant 0 : index
    %c0_96 = arith.constant 0 : index
    %185 = vector.load %arg4[%c10, %c0_95, %c0_96] : memref<14x8x128xf32, #tpu.memory_space<vmem>>, vector<1x8x128xf32>
    %186 = vector.shape_cast %185 : vector<1x8x128xf32> to vector<8x128xf32>
    %187 = vector.shape_cast %184 : vector<8x128xf32> to vector<1x8x128xf32>
    %cst_97 = arith.constant dense<0.000000e+00> : vector<8x128xf32>
    %188 = vector.multi_reduction <add>, %187, %cst_97 [0] : vector<1x8x128xf32> to vector<8x128xf32>
    %189 = arith.addf %186, %188 : vector<8x128xf32>
    %c10_98 = arith.constant 10 : index
    %c0_99 = arith.constant 0 : index
    %c0_100 = arith.constant 0 : index
    %190 = vector.load %arg4[%c10_98, %c0_99, %c0_100] : memref<14x8x128xf32, #tpu.memory_space<vmem>>, vector<1x8x128xf32>
    %191 = vector.shape_cast %190 : vector<1x8x128xf32> to vector<8x128xf32>
    %192 = vector.shape_cast %189 : vector<8x128xf32> to vector<1x8x128xf32>
    tpu.vector_store %arg4[%c10_98, %c0_99, %c0_100], %192 {strides = array<i32>} : memref<14x8x128xf32, #tpu.memory_space<vmem>>, vector<1x8x128xf32>,
    %c48_i32_101 = arith.constant 48 : i32
    %193 = vector.broadcast %c48_i32_101 : i32 to vector<8x128xi32>
    %194 = arith.cmpi sge, %12, %193 : vector<8x128xi32>
    %c72_i32 = arith.constant 72 : i32
    %195 = vector.broadcast %c72_i32 : i32 to vector<8x128xi32>
    %196 = arith.cmpi slt, %12, %195 : vector<8x128xi32>
    %197 = arith.andi %194, %196 : vector<8x128xi1>
    %cst_102 = arith.constant 0.000000e+00 : f32
    %198 = vector.broadcast %cst_102 : f32 to vector<8x128xf32>
    %199 = arith.select %197, %29, %198 : vector<8x128xi1>, vector<8x128xf32>
    %c11 = arith.constant 11 : index
    %c0_103 = arith.constant 0 : index
    %c0_104 = arith.constant 0 : index
    %200 = vector.load %arg4[%c11, %c0_103, %c0_104] : memref<14x8x128xf32, #tpu.memory_space<vmem>>, vector<1x8x128xf32>
    %201 = vector.shape_cast %200 : vector<1x8x128xf32> to vector<8x128xf32>
    %202 = vector.shape_cast %199 : vector<8x128xf32> to vector<1x8x128xf32>
    %cst_105 = arith.constant dense<0.000000e+00> : vector<8x128xf32>
    %203 = vector.multi_reduction <add>, %202, %cst_105 [0] : vector<1x8x128xf32> to vector<8x128xf32>
    %204 = arith.addf %201, %203 : vector<8x128xf32>
    %c11_106 = arith.constant 11 : index
    %c0_107 = arith.constant 0 : index
    %c0_108 = arith.constant 0 : index
    %205 = vector.load %arg4[%c11_106, %c0_107, %c0_108] : memref<14x8x128xf32, #tpu.memory_space<vmem>>, vector<1x8x128xf32>
    %206 = vector.shape_cast %205 : vector<1x8x128xf32> to vector<8x128xf32>
    %207 = vector.shape_cast %204 : vector<8x128xf32> to vector<1x8x128xf32>
    tpu.vector_store %arg4[%c11_106, %c0_107, %c0_108], %207 {strides = array<i32>} : memref<14x8x128xf32, #tpu.memory_space<vmem>>, vector<1x8x128xf32>,
    %c72_i32_109 = arith.constant 72 : i32
    %208 = vector.broadcast %c72_i32_109 : i32 to vector<8x128xi32>
    %209 = arith.cmpi sge, %12, %208 : vector<8x128xi32>
    %c104_i32 = arith.constant 104 : i32
    %210 = vector.broadcast %c104_i32 : i32 to vector<8x128xi32>
    %211 = arith.cmpi slt, %12, %210 : vector<8x128xi32>
    %212 = arith.andi %209, %211 : vector<8x128xi1>
    %cst_110 = arith.constant 0.000000e+00 : f32
    %213 = vector.broadcast %cst_110 : f32 to vector<8x128xf32>
    %214 = arith.select %212, %14, %213 : vector<8x128xi1>, vector<8x128xf32>
    %c12 = arith.constant 12 : index
    %c0_111 = arith.constant 0 : index
    %c0_112 = arith.constant 0 : index
    %215 = vector.load %arg4[%c12, %c0_111, %c0_112] : memref<14x8x128xf32, #tpu.memory_space<vmem>>, vector<1x8x128xf32>
    %216 = vector.shape_cast %215 : vector<1x8x128xf32> to vector<8x128xf32>
    %217 = vector.shape_cast %214 : vector<8x128xf32> to vector<1x8x128xf32>
    %cst_113 = arith.constant dense<0.000000e+00> : vector<8x128xf32>
    %218 = vector.multi_reduction <add>, %217, %cst_113 [0] : vector<1x8x128xf32> to vector<8x128xf32>
    %219 = arith.addf %216, %218 : vector<8x128xf32>
    %c12_114 = arith.constant 12 : index
    %c0_115 = arith.constant 0 : index
    %c0_116 = arith.constant 0 : index
    %220 = vector.load %arg4[%c12_114, %c0_115, %c0_116] : memref<14x8x128xf32, #tpu.memory_space<vmem>>, vector<1x8x128xf32>
    %221 = vector.shape_cast %220 : vector<1x8x128xf32> to vector<8x128xf32>
    %222 = vector.shape_cast %219 : vector<8x128xf32> to vector<1x8x128xf32>
    tpu.vector_store %arg4[%c12_114, %c0_115, %c0_116], %222 {strides = array<i32>} : memref<14x8x128xf32, #tpu.memory_space<vmem>>, vector<1x8x128xf32>,
    %c104_i32_117 = arith.constant 104 : i32
    %223 = vector.broadcast %c104_i32_117 : i32 to vector<8x128xi32>
    %224 = arith.cmpi sge, %12, %223 : vector<8x128xi32>
    %c144_i32 = arith.constant 144 : i32
    %225 = vector.broadcast %c144_i32 : i32 to vector<8x128xi32>
    %226 = arith.cmpi slt, %12, %225 : vector<8x128xi32>
    %227 = arith.andi %224, %226 : vector<8x128xi1>
    %cst_118 = arith.constant 0.000000e+00 : f32
    %228 = vector.broadcast %cst_118 : f32 to vector<8x128xf32>
    %229 = arith.select %227, %29, %228 : vector<8x128xi1>, vector<8x128xf32>
    %c13 = arith.constant 13 : index
    %c0_119 = arith.constant 0 : index
    %c0_120 = arith.constant 0 : index
    %230 = vector.load %arg4[%c13, %c0_119, %c0_120] : memref<14x8x128xf32, #tpu.memory_space<vmem>>, vector<1x8x128xf32>
    %231 = vector.shape_cast %230 : vector<1x8x128xf32> to vector<8x128xf32>
    %232 = vector.shape_cast %229 : vector<8x128xf32> to vector<1x8x128xf32>
    %cst_121 = arith.constant dense<0.000000e+00> : vector<8x128xf32>
    %233 = vector.multi_reduction <add>, %232, %cst_121 [0] : vector<1x8x128xf32> to vector<8x128xf32>
    %234 = arith.addf %231, %233 : vector<8x128xf32>
    %c13_122 = arith.constant 13 : index
    %c0_123 = arith.constant 0 : index
    %c0_124 = arith.constant 0 : index
    %235 = vector.load %arg4[%c13_122, %c0_123, %c0_124] : memref<14x8x128xf32, #tpu.memory_space<vmem>>, vector<1x8x128xf32>
    %236 = vector.shape_cast %235 : vector<1x8x128xf32> to vector<8x128xf32>
    %237 = vector.shape_cast %234 : vector<8x128xf32> to vector<1x8x128xf32>
    tpu.vector_store %arg4[%c13_122, %c0_123, %c0_124], %237 {strides = array<i32>} : memref<14x8x128xf32, #tpu.memory_space<vmem>>, vector<1x8x128xf32>,
    %c0_i32_125 = arith.constant 0 : i32
    %238 = arith.cmpi eq, %arg0, %c0_i32_125 : i32
    %239 = arith.extui %238 : i1 to i32
    %c0_i32_126 = arith.constant 0 : i32
    %240 = arith.cmpi ne, %239, %c0_i32_126 : i32
    scf.if %240 {
      %c0_127 = arith.constant 0 : index
      %c0_128 = arith.constant 0 : index
      %c0_129 = arith.constant 0 : index
      %241 = vector.load %arg4[%c0_127, %c0_128, %c0_129] : memref<14x8x128xf32, #tpu.memory_space<vmem>>, vector<1x8x128xf32>
      %242 = vector.shape_cast %241 : vector<1x8x128xf32> to vector<8x128xf32>
      %243 = vector.shape_cast %242 : vector<8x128xf32> to vector<1x8x128xf32>
      %cst_130 = arith.constant dense<0.000000e+00> : vector<1xf32>
      %244 = vector.multi_reduction <add>, %243, %cst_130 [1, 2] : vector<1x8x128xf32> to vector<1xf32>
      %245 = vector.shape_cast %244 : vector<1xf32> to vector<1x1x1xf32>
      %246 = vector.extract %245[0, 0, 0] : f32 from vector<1x1x1xf32>
      %c1_131 = arith.constant 1 : index
      %c0_132 = arith.constant 0 : index
      %c0_133 = arith.constant 0 : index
      %247 = vector.load %arg4[%c1_131, %c0_132, %c0_133] : memref<14x8x128xf32, #tpu.memory_space<vmem>>, vector<1x8x128xf32>
      %248 = vector.shape_cast %247 : vector<1x8x128xf32> to vector<8x128xf32>
      %249 = vector.shape_cast %248 : vector<8x128xf32> to vector<1x8x128xf32>
      %cst_134 = arith.constant dense<0.000000e+00> : vector<1xf32>
      %250 = vector.multi_reduction <add>, %249, %cst_134 [1, 2] : vector<1x8x128xf32> to vector<1xf32>
      %251 = vector.shape_cast %250 : vector<1xf32> to vector<1x1x1xf32>
      %252 = vector.extract %251[0, 0, 0] : f32 from vector<1x1x1xf32>
      %c2_135 = arith.constant 2 : index
      %c0_136 = arith.constant 0 : index
      %c0_137 = arith.constant 0 : index
      %253 = vector.load %arg4[%c2_135, %c0_136, %c0_137] : memref<14x8x128xf32, #tpu.memory_space<vmem>>, vector<1x8x128xf32>
      %254 = vector.shape_cast %253 : vector<1x8x128xf32> to vector<8x128xf32>
      %255 = vector.shape_cast %254 : vector<8x128xf32> to vector<1x8x128xf32>
      %cst_138 = arith.constant dense<0.000000e+00> : vector<1xf32>
      %256 = vector.multi_reduction <add>, %255, %cst_138 [1, 2] : vector<1x8x128xf32> to vector<1xf32>
      %257 = vector.shape_cast %256 : vector<1xf32> to vector<1x1x1xf32>
      %258 = vector.extract %257[0, 0, 0] : f32 from vector<1x1x1xf32>
      %c3_139 = arith.constant 3 : index
      %c0_140 = arith.constant 0 : index
      %c0_141 = arith.constant 0 : index
      %259 = vector.load %arg4[%c3_139, %c0_140, %c0_141] : memref<14x8x128xf32, #tpu.memory_space<vmem>>, vector<1x8x128xf32>
      %260 = vector.shape_cast %259 : vector<1x8x128xf32> to vector<8x128xf32>
      %261 = vector.shape_cast %260 : vector<8x128xf32> to vector<1x8x128xf32>
      %cst_142 = arith.constant dense<0.000000e+00> : vector<1xf32>
      %262 = vector.multi_reduction <add>, %261, %cst_142 [1, 2] : vector<1x8x128xf32> to vector<1xf32>
      %263 = vector.shape_cast %262 : vector<1xf32> to vector<1x1x1xf32>
      %264 = vector.extract %263[0, 0, 0] : f32 from vector<1x1x1xf32>
      %c4_143 = arith.constant 4 : index
      %c0_144 = arith.constant 0 : index
      %c0_145 = arith.constant 0 : index
      %265 = vector.load %arg4[%c4_143, %c0_144, %c0_145] : memref<14x8x128xf32, #tpu.memory_space<vmem>>, vector<1x8x128xf32>
      %266 = vector.shape_cast %265 : vector<1x8x128xf32> to vector<8x128xf32>
      %267 = vector.shape_cast %266 : vector<8x128xf32> to vector<1x8x128xf32>
      %cst_146 = arith.constant dense<0.000000e+00> : vector<1xf32>
      %268 = vector.multi_reduction <add>, %267, %cst_146 [1, 2] : vector<1x8x128xf32> to vector<1xf32>
      %269 = vector.shape_cast %268 : vector<1xf32> to vector<1x1x1xf32>
      %270 = vector.extract %269[0, 0, 0] : f32 from vector<1x1x1xf32>
      %cst_147 = arith.constant 8.000000e+00 : f32
      %271 = arith.divf %246, %cst_147 : f32
      %cst_148 = arith.constant 8.000000e+00 : f32
      %272 = arith.divf %252, %cst_148 : f32
      %cst_149 = arith.constant 8.000000e+00 : f32
      %273 = arith.divf %258, %cst_149 : f32
      %274 = arith.mulf %271, %272 : f32
      %275 = arith.subf %273, %274 : f32
      %cst_150 = arith.constant 8.000000e+00 : f32
      %276 = arith.mulf %cst_150, %271 : f32
      %277 = arith.mulf %276, %271 : f32
      %278 = arith.subf %264, %277 : f32
      %cst_151 = arith.constant 8.000000e+00 : f32
      %cst_152 = arith.constant 1.000000e+00 : f32
      %279 = arith.subf %cst_151, %cst_152 : f32
      %280 = arith.divf %278, %279 : f32
      %cst_153 = arith.constant 8.000000e+00 : f32
      %281 = arith.mulf %cst_153, %272 : f32
      %282 = arith.mulf %281, %272 : f32
      %283 = arith.subf %270, %282 : f32
      %cst_154 = arith.constant 8.000000e+00 : f32
      %cst_155 = arith.constant 1.000000e+00 : f32
      %284 = arith.subf %cst_154, %cst_155 : f32
      %285 = arith.divf %283, %284 : f32
      %286 = arith.addf %280, %285 : f32
      %287 = arith.subf %271, %272 : f32
      %288 = arith.subf %271, %272 : f32
      %289 = arith.mulf %287, %288 : f32
      %290 = arith.addf %286, %289 : f32
      %cst_156 = arith.constant 9.99999993E-9 : f32
      %291 = arith.addf %290, %cst_156 : f32
      %cst_157 = arith.constant 2.000000e+00 : f32
      %292 = arith.mulf %cst_157, %275 : f32
      %293 = arith.divf %292, %291 : f32
      %cst_158 = arith.constant 1.000000e+00 : f32
      %294 = arith.subf %cst_158, %293 : f32
      %c0_159 = arith.constant 0 : index
      %c0_160 = arith.constant 0 : index
      %295 = memref.load %arg3[%c0_159, %c0_160] : memref<1x6xf32, #tpu.memory_space<smem>>
      memref.store %294, %arg3[%c0_159, %c0_160] : memref<1x6xf32, #tpu.memory_space<smem>>
      %c5_161 = arith.constant 5 : index
      %c0_162 = arith.constant 0 : index
      %c0_163 = arith.constant 0 : index
      %296 = vector.load %arg4[%c5_161, %c0_162, %c0_163] : memref<14x8x128xf32, #tpu.memory_space<vmem>>, vector<1x8x128xf32>
      %297 = vector.shape_cast %296 : vector<1x8x128xf32> to vector<8x128xf32>
      %298 = vector.shape_cast %297 : vector<8x128xf32> to vector<1x8x128xf32>
      %cst_164 = arith.constant dense<0.000000e+00> : vector<1xf32>
      %299 = vector.multi_reduction <add>, %298, %cst_164 [1, 2] : vector<1x8x128xf32> to vector<1xf32>
      %300 = vector.shape_cast %299 : vector<1xf32> to vector<1x1x1xf32>
      %301 = vector.extract %300[0, 0, 0] : f32 from vector<1x1x1xf32>
      %c6_165 = arith.constant 6 : index
      %c0_166 = arith.constant 0 : index
      %c0_167 = arith.constant 0 : index
      %302 = vector.load %arg4[%c6_165, %c0_166, %c0_167] : memref<14x8x128xf32, #tpu.memory_space<vmem>>, vector<1x8x128xf32>
      %303 = vector.shape_cast %302 : vector<1x8x128xf32> to vector<8x128xf32>
      %304 = vector.shape_cast %303 : vector<8x128xf32> to vector<1x8x128xf32>
      %cst_168 = arith.constant dense<0.000000e+00> : vector<1xf32>
      %305 = vector.multi_reduction <add>, %304, %cst_168 [1, 2] : vector<1x8x128xf32> to vector<1xf32>
      %306 = vector.shape_cast %305 : vector<1xf32> to vector<1x1x1xf32>
      %307 = vector.extract %306[0, 0, 0] : f32 from vector<1x1x1xf32>
      %c7_169 = arith.constant 7 : index
      %c0_170 = arith.constant 0 : index
      %c0_171 = arith.constant 0 : index
      %308 = vector.load %arg4[%c7_169, %c0_170, %c0_171] : memref<14x8x128xf32, #tpu.memory_space<vmem>>, vector<1x8x128xf32>
      %309 = vector.shape_cast %308 : vector<1x8x128xf32> to vector<8x128xf32>
      %310 = vector.shape_cast %309 : vector<8x128xf32> to vector<1x8x128xf32>
      %cst_172 = arith.constant dense<0.000000e+00> : vector<1xf32>
      %311 = vector.multi_reduction <add>, %310, %cst_172 [1, 2] : vector<1x8x128xf32> to vector<1xf32>
      %312 = vector.shape_cast %311 : vector<1xf32> to vector<1x1x1xf32>
      %313 = vector.extract %312[0, 0, 0] : f32 from vector<1x1x1xf32>
      %c8_173 = arith.constant 8 : index
      %c0_174 = arith.constant 0 : index
      %c0_175 = arith.constant 0 : index
      %314 = vector.load %arg4[%c8_173, %c0_174, %c0_175] : memref<14x8x128xf32, #tpu.memory_space<vmem>>, vector<1x8x128xf32>
      %315 = vector.shape_cast %314 : vector<1x8x128xf32> to vector<8x128xf32>
      %316 = vector.shape_cast %315 : vector<8x128xf32> to vector<1x8x128xf32>
      %cst_176 = arith.constant dense<0.000000e+00> : vector<1xf32>
      %317 = vector.multi_reduction <add>, %316, %cst_176 [1, 2] : vector<1x8x128xf32> to vector<1xf32>
      %318 = vector.shape_cast %317 : vector<1xf32> to vector<1x1x1xf32>
      %319 = vector.extract %318[0, 0, 0] : f32 from vector<1x1x1xf32>
      %c9_177 = arith.constant 9 : index
      %c0_178 = arith.constant 0 : index
      %c0_179 = arith.constant 0 : index
      %320 = vector.load %arg4[%c9_177, %c0_178, %c0_179] : memref<14x8x128xf32, #tpu.memory_space<vmem>>, vector<1x8x128xf32>
      %321 = vector.shape_cast %320 : vector<1x8x128xf32> to vector<8x128xf32>
      %322 = vector.shape_cast %321 : vector<8x128xf32> to vector<1x8x128xf32>
      %cst_180 = arith.constant dense<0.000000e+00> : vector<1xf32>
      %323 = vector.multi_reduction <add>, %322, %cst_180 [1, 2] : vector<1x8x128xf32> to vector<1xf32>
      %324 = vector.shape_cast %323 : vector<1xf32> to vector<1x1x1xf32>
      %325 = vector.extract %324[0, 0, 0] : f32 from vector<1x1x1xf32>
      %cst_181 = arith.constant 8.000000e+00 : f32
      %326 = arith.divf %301, %cst_181 : f32
      %cst_182 = arith.constant 8.000000e+00 : f32
      %327 = arith.divf %307, %cst_182 : f32
      %cst_183 = arith.constant 8.000000e+00 : f32
      %328 = arith.divf %313, %cst_183 : f32
      %329 = arith.mulf %326, %327 : f32
      %330 = arith.subf %328, %329 : f32
      %cst_184 = arith.constant 8.000000e+00 : f32
      %331 = arith.mulf %cst_184, %326 : f32
      %332 = arith.mulf %331, %326 : f32
      %333 = arith.subf %319, %332 : f32
      %cst_185 = arith.constant 8.000000e+00 : f32
      %cst_186 = arith.constant 1.000000e+00 : f32
      %334 = arith.subf %cst_185, %cst_186 : f32
      %335 = arith.divf %333, %334 : f32
      %cst_187 = arith.constant 8.000000e+00 : f32
      %336 = arith.mulf %cst_187, %327 : f32
      %337 = arith.mulf %336, %327 : f32
      %338 = arith.subf %325, %337 : f32
      %cst_188 = arith.constant 8.000000e+00 : f32
      %cst_189 = arith.constant 1.000000e+00 : f32
      %339 = arith.subf %cst_188, %cst_189 : f32
      %340 = arith.divf %338, %339 : f32
      %341 = arith.addf %335, %340 : f32
      %342 = arith.subf %326, %327 : f32
      %343 = arith.subf %326, %327 : f32
      %344 = arith.mulf %342, %343 : f32
      %345 = arith.addf %341, %344 : f32
      %cst_190 = arith.constant 9.99999993E-9 : f32
      %346 = arith.addf %345, %cst_190 : f32
      %cst_191 = arith.constant 2.000000e+00 : f32
      %347 = arith.mulf %cst_191, %330 : f32
      %348 = arith.divf %347, %346 : f32
      %cst_192 = arith.constant 1.000000e+00 : f32
      %349 = arith.subf %cst_192, %348 : f32
      %c0_193 = arith.constant 0 : index
      %c1_194 = arith.constant 1 : index
      %350 = memref.load %arg3[%c0_193, %c1_194] : memref<1x6xf32, #tpu.memory_space<smem>>
      memref.store %349, %arg3[%c0_193, %c1_194] : memref<1x6xf32, #tpu.memory_space<smem>>
      %c10_195 = arith.constant 10 : index
      %c0_196 = arith.constant 0 : index
      %c0_197 = arith.constant 0 : index
      %351 = vector.load %arg4[%c10_195, %c0_196, %c0_197] : memref<14x8x128xf32, #tpu.memory_space<vmem>>, vector<1x8x128xf32>
      %352 = vector.shape_cast %351 : vector<1x8x128xf32> to vector<8x128xf32>
      %353 = vector.shape_cast %352 : vector<8x128xf32> to vector<1x8x128xf32>
      %cst_198 = arith.constant dense<0.000000e+00> : vector<1xf32>
      %354 = vector.multi_reduction <add>, %353, %cst_198 [1, 2] : vector<1x8x128xf32> to vector<1xf32>
      %355 = vector.shape_cast %354 : vector<1xf32> to vector<1x1x1xf32>
      %356 = vector.extract %355[0, 0, 0] : f32 from vector<1x1x1xf32>
      %cst_199 = arith.constant 3.200000e+01 : f32
      %357 = arith.divf %356, %cst_199 : f32
      %c0_200 = arith.constant 0 : index
      %c2_201 = arith.constant 2 : index
      %358 = memref.load %arg3[%c0_200, %c2_201] : memref<1x6xf32, #tpu.memory_space<smem>>
      memref.store %357, %arg3[%c0_200, %c2_201] : memref<1x6xf32, #tpu.memory_space<smem>>
      %c11_202 = arith.constant 11 : index
      %c0_203 = arith.constant 0 : index
      %c0_204 = arith.constant 0 : index
      %359 = vector.load %arg4[%c11_202, %c0_203, %c0_204] : memref<14x8x128xf32, #tpu.memory_space<vmem>>, vector<1x8x128xf32>
      %360 = vector.shape_cast %359 : vector<1x8x128xf32> to vector<8x128xf32>
      %361 = vector.shape_cast %360 : vector<8x128xf32> to vector<1x8x128xf32>
      %cst_205 = arith.constant dense<0.000000e+00> : vector<1xf32>
      %362 = vector.multi_reduction <add>, %361, %cst_205 [1, 2] : vector<1x8x128xf32> to vector<1xf32>
      %363 = vector.shape_cast %362 : vector<1xf32> to vector<1x1x1xf32>
      %364 = vector.extract %363[0, 0, 0] : f32 from vector<1x1x1xf32>
      %cst_206 = arith.constant 2.400000e+01 : f32
      %365 = arith.divf %364, %cst_206 : f32
      %c0_207 = arith.constant 0 : index
      %c3_208 = arith.constant 3 : index
      %366 = memref.load %arg3[%c0_207, %c3_208] : memref<1x6xf32, #tpu.memory_space<smem>>
      memref.store %365, %arg3[%c0_207, %c3_208] : memref<1x6xf32, #tpu.memory_space<smem>>
      %c12_209 = arith.constant 12 : index
      %c0_210 = arith.constant 0 : index
      %c0_211 = arith.constant 0 : index
      %367 = vector.load %arg4[%c12_209, %c0_210, %c0_211] : memref<14x8x128xf32, #tpu.memory_space<vmem>>, vector<1x8x128xf32>
      %368 = vector.shape_cast %367 : vector<1x8x128xf32> to vector<8x128xf32>
      %369 = vector.shape_cast %368 : vector<8x128xf32> to vector<1x8x128xf32>
      %cst_212 = arith.constant dense<0.000000e+00> : vector<1xf32>
      %370 = vector.multi_reduction <add>, %369, %cst_212 [1, 2] : vector<1x8x128xf32> to vector<1xf32>
      %371 = vector.shape_cast %370 : vector<1xf32> to vector<1x1x1xf32>
      %372 = vector.extract %371[0, 0, 0] : f32 from vector<1x1x1xf32>
      %cst_213 = arith.constant 3.200000e+01 : f32
      %373 = arith.divf %372, %cst_213 : f32
      %c0_214 = arith.constant 0 : index
      %c4_215 = arith.constant 4 : index
      %374 = memref.load %arg3[%c0_214, %c4_215] : memref<1x6xf32, #tpu.memory_space<smem>>
      memref.store %373, %arg3[%c0_214, %c4_215] : memref<1x6xf32, #tpu.memory_space<smem>>
      %c13_216 = arith.constant 13 : index
      %c0_217 = arith.constant 0 : index
      %c0_218 = arith.constant 0 : index
      %375 = vector.load %arg4[%c13_216, %c0_217, %c0_218] : memref<14x8x128xf32, #tpu.memory_space<vmem>>, vector<1x8x128xf32>
      %376 = vector.shape_cast %375 : vector<1x8x128xf32> to vector<8x128xf32>
      %377 = vector.shape_cast %376 : vector<8x128xf32> to vector<1x8x128xf32>
      %cst_219 = arith.constant dense<0.000000e+00> : vector<1xf32>
      %378 = vector.multi_reduction <add>, %377, %cst_219 [1, 2] : vector<1x8x128xf32> to vector<1xf32>
      %379 = vector.shape_cast %378 : vector<1xf32> to vector<1x1x1xf32>
      %380 = vector.extract %379[0, 0, 0] : f32 from vector<1x1x1xf32>
      %cst_220 = arith.constant 4.000000e+01 : f32
      %381 = arith.divf %380, %cst_220 : f32
      %c0_221 = arith.constant 0 : index
      %c5_222 = arith.constant 5 : index
      %382 = memref.load %arg3[%c0_221, %c5_222] : memref<1x6xf32, #tpu.memory_space<smem>>
      memref.store %381, %arg3[%c0_221, %c5_222] : memref<1x6xf32, #tpu.memory_space<smem>>
    } else {
    }
    return
  }
  func.func @transform_0(%arg0: i32) -> (i32, i32) {
    %c0_i32 = arith.constant 0 : i32
    %c0_i32_0 = arith.constant 0 : i32
    return %arg0, %c0_i32 : i32, i32
  }
  func.func @transform_1(%arg0: i32) -> (i32, i32) {
    %c0_i32 = arith.constant 0 : i32
    %c0_i32_0 = arith.constant 0 : i32
    return %arg0, %c0_i32 : i32, i32
  }
  func.func @transform_2(%arg0: i32) -> (i32, i32) {
    %c0_i32 = arith.constant 0 : i32
    %c0_i32_0 = arith.constant 0 : i32
    %c0_i32_1 = arith.constant 0 : i32
    return %c0_i32, %c0_i32_0 : i32, i32
  }
}

</mosaic_0001>

<bundles_post_ra>
// kernel: tpu_custom_call.1
= control target key start
LH: loop header
LB: loop body
LE: loop exit
PB: predicated region body
PF: predicated region fallthrough
CT: control target
= control target key end

     0   :  { %7 = vsyncpa [#allocation4], 0  ;;  %s661_s0 = inlined_call_operand.hbm [shape: f32[8,128], index: 0, kind: input, shape index: {}]   ;;  %s662_s1 = inlined_call_operand.hbm [shape: f32[8,128], index: 1, kind: input, shape index: {}]   ;;  %s663_s2 = inlined_call_operand.hbm [shape: f32[1,6], index: 2, kind: output, shape index: {}]  }
   0x1   :  { %8 = vsyncpa [#allocation7], 0 }
   0x2   :  { %9 = vsyncpa [#allocation5], 0  ;;  %s550_s9 = smov [#allocation3]   ;;  %s551_s11 = smov [#allocation6]  }
   0x3   :  { %s16_s10 = sshll.u32 %s550_s9, 4  ;;  %s26_s12 = sshll.u32 %s551_s11, 4  ;;  %s17_s10 = int_to_ptr.vmem [resolvable:$true] %s16_s10  ;;  %s27_s12 = int_to_ptr.vmem [resolvable:$true] %s26_s12 }
   0x4   :  { %s490_s15 = scalar_lea.hbm %s661_s0, 128 }
   0x5   :  { %p491_p0 = scmp.ne.s32.totalorder %s661_s0, %s490_s15  ;;  %p494_p1 = scmp.lt.u32.totalorder %s490_s15, %s661_s0 }
   0x7   :  { %p496_p2 = pnand %p494_p1, %p491_p0 }
   0x9   :  { %499 = shalt.err (!%p496_p2)
}
   0xa   :  { %s500_s20 = scalar_lea.vmem %s17_s10, 128  ;;  %p505_p4 = scmp.lt.s32.totalorder %s17_s10, %s17_s10 }
   0xb   :  { %p501_p3 = scmp.ne.s32.totalorder %s17_s10, %s500_s20  ;;  %p506_p5 = scmp.lt.s32.totalorder %s500_s20, %s500_s20 }
   0xd   :  { %p507_p6 = por %p506_p5, %p505_p4 }
   0xf   :  { %p508_p7 = pnand %p507_p6, %p501_p3 }
  0x11   :  { %511 = shalt.err (!%p508_p7)
}
  0x12   :  { %19 = dma.hbm_to_vmem [thread:$0]  %s661_s0, 128, %s17_s10, [#allocation4]  }
  0x13   :  { %s512_s25 = scalar_lea.hbm %s662_s1, 128 }
  0x14   :  { %p513_p8 = scmp.ne.s32.totalorder %s662_s1, %s512_s25  ;;  %p516_p9 = scmp.lt.u32.totalorder %s512_s25, %s662_s1 }
  0x16   :  { %p518_p10 = pnand %p516_p9, %p513_p8 }
  0x18   :  { %521 = shalt.err (!%p518_p10)
}
  0x19   :  { %s522_s30 = scalar_lea.vmem %s27_s12, 128  ;;  %p527_p12 = scmp.lt.s32.totalorder %s27_s12, %s27_s12 }
  0x1a   :  { %p523_p11 = scmp.ne.s32.totalorder %s27_s12, %s522_s30  ;;  %p528_p13 = scmp.lt.s32.totalorder %s522_s30, %s522_s30 }
  0x1c   :  { %p529_p0 = por %p528_p13, %p527_p12 }
  0x1e   :  { %p530_p1 = pnand %p529_p0, %p523_p11 }
  0x20   :  { %533 = shalt.err (!%p530_p1)
}
  0x21   :  { %29 = dma.hbm_to_vmem [thread:$0]  %s662_s1, 128, %s27_s12, [#allocation7]  }
  0x22   :  { %544 = dma.done.wait [#allocation4], 128  }
  0x23   :  { %545 = vsyncadd [#allocation4], 4294967168 }
  0x24   :  { %546 = dma.done.wait [#allocation7], 128  }
  0x25   :  { %547 = vsyncadd [#allocation7], 4294967168  ;;  %v56_v0 = vlaneseq  ;;  %v55_v9 = vld [vmem:[#allocation6] sm:$0xff]  ;;  %v54_v10 = vld [vmem:[#allocation3] sm:$0xff] }
  0x26   :  { %v79_v14 = vmul.f32 %v55_v9, %v54_v10  ;;  %v80_v16 = vmul.f32 %v55_v9, %v55_v9  ;;  %v81_v22 = vmul.f32 %v54_v10, %v54_v10  ;;  %v70_v23 = vsub.f32 1.0, %v54_v10 }
  0x27   :  { %v57_v1 = vshrl.u32 %v56_v0, 7  ;;  %v62_v2 = vand.u32 127, %v56_v0  ;;  %482 = vlog2.f32 %v54_v10  ;;  %v75_v36 = vsub.f32 1.0, %v55_v9 }
  0x28   :  { %484 = vlog2.f32 %v70_v23  ;;  %v65_v40 = vsub.f32 %v54_v10, %v55_v9 }
  0x29   :  { %v63_v3 = vmul.u32 128, %v57_v1 }
  0x2a   :  { %v66_v42 = vmul.f32 %v65_v40, %v65_v40 }
  0x2b   :  { %v592_v4 = vadd.s32 %v63_v3, %v62_v2 }
  0x2d   :  { %v86_v5 = vsub.s32 0, %v592_v4  ;;  %vm85_vm0 = vcmp.lt.s32.totalorder %v592_v4, 0  ;;  %vm82_vm1 = vcmp.ge.s32.totalorder %v592_v4, 0  ;;  %vm83_vm2 = vcmp.lt.s32.totalorder %v592_v4, 16 }
  0x2e   :  { %vm599_vm3 = vmand %vm82_vm1, %vm83_vm2  ;;  %vm169_vm11 = vcmp.ge.s32.totalorder %v592_v4, 48  ;;  %vm170_vm12 = vcmp.lt.s32.totalorder %v592_v4, 72  ;;  %vm160_vm13 = vcmp.ge.s32.totalorder %v592_v4, 16  ;;  %vm161_vm15 = vcmp.lt.s32.totalorder %v592_v4, 48 }
  0x2f   :  { %v446_v6 = vmin.u32 %v86_v5, %v592_v4  ;;  %vm171_vm14 = vmand %vm169_vm11, %vm170_vm12  ;;  %vm187_vm1 = vcmp.ge.s32.totalorder %v592_v4, 104  ;;  %vm188_vm2 = vcmp.lt.s32.totalorder %v592_v4, 144 }
  0x31   :  { %v89_v7 = vand.u32 1, %v446_v6  ;;  %v483_v29 = vpop.eup %482 }
  0x32   :  { %v485_v30 = vpop.eup %484  ;;  %v68_v33 = vmul.f32 0.6931472, %v483_v29 }
  0x33   :  { %v90_v8 = vsub.s32 0, %v89_v7  ;;  %v72_v34 = vmul.f32 0.6931472, %v485_v30 }
  0x34   :  { %v69_v35 = vmax.f32 %v68_v33, -100.0 }
  0x35   :  { %v91_v11 = vsel %vm85_vm0, %v90_v8, %v89_v7  ;;  %v73_v37 = vmax.f32 %v72_v34, -100.0  ;;  %vm162_vm0 = vmand %vm160_vm13, %vm161_vm15 }
  0x36   :  { %vm92_vm4 = vcmp.ne.s32.totalorder %v91_v11, 0  ;;  %vm93_vm5 = vcmp.lt.s32.totalorder %v91_v11, 0  ;;  %v95_v13 = vadd.s32 2, %v91_v11  ;;  %v74_v38 = vmul.f32 %v69_v35, %v55_v9 }
  0x37   :  { %vm94_vm6 = vmand %vm93_vm5, %vm92_vm4  ;;  %v76_v39 = vmul.f32 %v75_v36, %v73_v37  ;;  %v163_v45 = vsel %vm162_vm0, %v66_v42, 0.0  ;;  %vm179_vm4 = vcmp.lt.s32.totalorder %v592_v4, 104 }
  0x38   :  { %v96_v15 = vsel %vm94_vm6, %v95_v13, %v91_v11  ;;  %vm189_vm5 = vmand %vm187_vm1, %vm188_vm2 }
  0x39   :  { %vm97_vm7 = vcmp.eq.s32.totalorder %v96_v15, 0  ;;  %vm128_vm9 = vcmp.eq.s32.totalorder %v96_v15, 1  ;;  %v77_v41 = vadd.f32 %v76_v39, %v74_v38 }
  0x3a   :  { %vm605_vm8 = vmand %vm599_vm3, %vm97_vm7 }
  0x3b   :  { %v99_v18 = vsel %vm605_vm8, %v55_v9, 0.0  ;;  %v110_v19 = vsel %vm605_vm8, %v79_v14, 0.0  ;;  %v104_v20 = vsel %vm605_vm8, %v54_v10, 0.0  ;;  %v116_v21 = vsel %vm605_vm8, %v80_v16, 0.0  ;;  %vm619_vm10 = vmand %vm599_vm3, %vm128_vm9 }
  0x3c   :  { %200 = vadd.xlane.f32.xlu0 %v99_v18  ;;  %220 = vadd.xlane.f32.xlu1 %v110_v19  ;;  %v122_v25 = vsel %vm605_vm8, %v81_v22, 0.0  ;;  %v130_v26 = vsel %vm619_vm10, %v55_v9, 0.0  ;;  %v136_v27 = vsel %vm619_vm10, %v54_v10, 0.0  ;;  %v142_v28 = vsel %vm619_vm10, %v79_v14, 0.0 }
  0x3d   :  { %v148_v31 = vsel %vm619_vm10, %v80_v16, 0.0  ;;  %v154_v32 = vsel %vm619_vm10, %v81_v22, 0.0  ;;  %v78_v43 = vsub.f32 0.0, %v77_v41  ;;  %vm178_vm3 = vcmp.ge.s32.totalorder %v592_v4, 72 }
  0x3e   :  { %vm180_vm6 = vmand %vm178_vm3, %vm179_vm4 }
  0x3f   :  { %v172_v44 = vsel %vm171_vm14, %v78_v43, 0.0  ;;  %v190_v46 = vsel %vm189_vm5, %v78_v43, 0.0  ;;  %v181_v47 = vsel %vm180_vm6, %v66_v42, 0.0 }
  0x40   :  { %210 = vadd.xlane.f32.xlu0 %v104_v20  ;;  %230 = vadd.xlane.f32.xlu1 %v116_v21 }
  0x44   :  { %240 = vadd.xlane.f32.xlu0 %v122_v25  ;;  %286 = vadd.xlane.f32.xlu1 %v130_v26 }
  0x48   :  { %296 = vadd.xlane.f32.xlu0 %v136_v27  ;;  %306 = vadd.xlane.f32.xlu1 %v142_v28 }
  0x4c   :  { %316 = vadd.xlane.f32.xlu0 %v148_v31  ;;  %326 = vadd.xlane.f32.xlu1 %v154_v32 }
  0x50   :  { %387 = vadd.xlane.f32.xlu1 %v172_v44  ;;  %372 = vadd.xlane.f32.xlu0 %v163_v45 }
  0x54   :  { %417 = vadd.xlane.f32.xlu1 %v190_v46  ;;  %402 = vadd.xlane.f32.xlu0 %v181_v47 }
  0xc9   :  { %v201_v48 = vpop.xlane.xlu0 %200  ;;  %v221_v49 = vpop.xlane.xlu1 %220 }
  0xca   :  { %v202_v50 = vrot.slane %v201_v48, 4  ;;  %v222_v51 = vrot.slane %v221_v49, 4 }
  0xcc   :  { %v203_v52 = vadd.f32 %v202_v50, %v201_v48  ;;  %v223_v53 = vadd.f32 %v222_v51, %v221_v49 }
  0xcd   :  { %v211_v54 = vpop.xlane.xlu0 %210  ;;  %v231_v55 = vpop.xlane.xlu1 %230 }
  0xce   :  { %v204_v56 = vrot.slane %v203_v52, 2  ;;  %v224_v57 = vrot.slane %v223_v53, 2  ;;  %v212_v58 = vrot.slane %v211_v54, 4  ;;  %v232_v59 = vrot.slane %v231_v55, 4 }
  0xd0   :  { %v213_v60 = vadd.f32 %v212_v58, %v211_v54  ;;  %v233_v61 = vadd.f32 %v232_v59, %v231_v55  ;;  %v205_v62 = vadd.f32 %v204_v56, %v203_v52  ;;  %v225_v0 = vadd.f32 %v224_v57, %v223_v53 }
  0xd1   :  { %v241_v63 = vpop.xlane.xlu0 %240  ;;  %v287_v19 = vpop.xlane.xlu1 %286 }
  0xd2   :  { %v214_v1 = vrot.slane %v213_v60, 2  ;;  %v234_v2 = vrot.slane %v233_v61, 2  ;;  %v242_v3 = vrot.slane %v241_v63, 4  ;;  %v206_v4 = vrot.slane %v205_v62, 1 }
  0xd3   :  { %v226_v9 = vrot.slane %v225_v0, 1  ;;  %v288_v24 = vrot.slane %v287_v19, 4 }
  0xd4   :  { %v243_v5 = vadd.f32 %v242_v3, %v241_v63  ;;  %v207_v6 = vadd.f32 %v206_v4, %v205_v62  ;;  %v215_v7 = vadd.f32 %v214_v1, %v213_v60  ;;  %v235_v8 = vadd.f32 %v234_v2, %v233_v61 }
  0xd5   :  { %v227_v16 = vadd.f32 %v226_v9, %v225_v0  ;;  %v307_v20 = vpop.xlane.xlu1 %306  ;;  %v297_v21 = vpop.xlane.xlu0 %296  ;;  %v289_v29 = vadd.f32 %v288_v24, %v287_v19 }
  0xd6   :  { %v244_v10 = vrot.slane %v243_v5, 2  ;;  %447 = vpush %v207_v6  ;;  %v216_v11 = vrot.slane %v215_v7, 1  ;;  %v236_v12 = vrot.slane %v235_v8, 1  ;;  %v298_v25 = vrot.slane %v297_v21, 4 }
  0xd7   :  { %v308_v27 = vrot.slane %v307_v20, 4  ;;  %v290_v34 = vrot.slane %v289_v29, 2 }
  0xd8   :  { %v217_v13 = vadd.f32 %v216_v11, %v215_v7  ;;  %v237_v14 = vadd.f32 %v236_v12, %v235_v8  ;;  %v245_v15 = vadd.f32 %v244_v10, %v243_v5  ;;  %v299_v30 = vadd.f32 %v298_v25, %v297_v21 }
  0xd9   :  { %v317_v22 = vpop.xlane.xlu0 %316  ;;  %v327_v23 = vpop.xlane.xlu1 %326  ;;  %v309_v32 = vadd.f32 %v308_v27, %v307_v20  ;;  %v291_v40 = vadd.f32 %v290_v34, %v289_v29 }
  0xda   :  { %449 = vpush %v217_v13  ;;  %v246_v17 = vrot.slane %v245_v15, 1  ;;  %v318_v26 = vrot.slane %v317_v22, 4  ;;  %v328_v28 = vrot.slane %v327_v23, 4  ;;  %v300_v36 = vrot.slane %v299_v30, 2 }
  0xdb   :  { %451 = vpush %v227_v16  ;;  %v310_v38 = vrot.slane %v309_v32, 2  ;;  %v292_v45 = vrot.slane %v291_v40, 1 }
  0xdc   :  { %453 = vpush %v237_v14  ;;  %v247_v18 = vadd.f32 %v246_v17, %v245_v15  ;;  %v319_v31 = vadd.f32 %v318_v26, %v317_v22  ;;  %v329_v33 = vadd.f32 %v328_v28, %v327_v23  ;;  %v301_v41 = vadd.f32 %v300_v36, %v299_v30 }
  0xdd   :  { %v311_v43 = vadd.f32 %v310_v38, %v309_v32  ;;  %v293_v51 = vadd.f32 %v292_v45, %v291_v40  ;;  %v373_v56 = vpop.xlane.xlu0 %372  ;;  %v388_v57 = vpop.xlane.xlu1 %387 }
  0xde   :  { %455 = vpush %v247_v18  ;;  %v320_v37 = vrot.slane %v319_v31, 2  ;;  %v330_v39 = vrot.slane %v329_v33, 2  ;;  %v302_v46 = vrot.slane %v301_v41, 1  ;;  %v374_v59 = vrot.slane %v373_v56, 4 }
  0xdf   :  { %v312_v48 = vrot.slane %v311_v43, 1  ;;  %v389_v61 = vrot.slane %v388_v57, 4 }
  0xe0   :  { %v321_v42 = vadd.f32 %v320_v37, %v319_v31  ;;  %v331_v44 = vadd.f32 %v330_v39, %v329_v33  ;;  %v303_v52 = vadd.f32 %v302_v46, %v301_v41  ;;  %v375_v0 = vadd.f32 %v374_v59, %v373_v56 }
  0xe1   :  { %v313_v54 = vadd.f32 %v312_v48, %v311_v43  ;;  %v403_v58 = vpop.xlane.xlu0 %402  ;;  %v418_v60 = vpop.xlane.xlu1 %417  ;;  %v390_v1 = vadd.f32 %v389_v61, %v388_v57 }
  0xe2   :  { %v322_v47 = vrot.slane %v321_v42, 1  ;;  %v332_v49 = vrot.slane %v331_v44, 1  ;;  %v404_v62 = vrot.slane %v403_v58, 4  ;;  %v419_v63 = vrot.slane %v418_v60, 4 }
  0xe3   :  { %v376_v4 = vrot.slane %v375_v0, 2  ;;  %v391_v6 = vrot.slane %v390_v1, 2 }
  0xe4   :  { %v323_v53 = vadd.f32 %v322_v47, %v321_v42  ;;  %v333_v55 = vadd.f32 %v332_v49, %v331_v44  ;;  %v405_v2 = vadd.f32 %v404_v62, %v403_v58  ;;  %v420_v3 = vadd.f32 %v419_v63, %v418_v60 }
  0xe5   :  { %v377_v9 = vadd.f32 %v376_v4, %v375_v0  ;;  %v392_v10 = vadd.f32 %v391_v6, %v390_v1 }
  0xe6   :  { %v406_v7 = vrot.slane %v405_v2, 2  ;;  %v421_v8 = vrot.slane %v420_v3, 2 }
  0xe7   :  { %v378_v13 = vrot.slane %v377_v9, 1  ;;  %v393_v14 = vrot.slane %v392_v10, 1 }
  0xe8   :  { %v407_v11 = vadd.f32 %v406_v7, %v405_v2  ;;  %v422_v12 = vadd.f32 %v421_v8, %v420_v3 }
  0xe9   :  { %v379_v18 = vadd.f32 %v378_v13, %v377_v9  ;;  %v394_v19 = vadd.f32 %v393_v14, %v392_v10 }
  0xea   :  { %v408_v15 = vrot.slane %v407_v11, 1  ;;  %v423_v16 = vrot.slane %v422_v12, 1 }
  0xec   :  { %v409_v20 = vadd.f32 %v408_v15, %v407_v11  ;;  %v424_v21 = vadd.f32 %v423_v16, %v422_v12 }
 0x107   :  { %s448_s1 = spop %447 }
 0x108   :  { %s251_s4 = smul.f32 0.125, %s448_s1 }
 0x10a   :  { %s260_s6 = smul.f32 8.0, %s251_s4 }
 0x10b   :  { %s450_s5 = spop %449 }
 0x10c   :  { %s254_s7 = smul.f32 0.125, %s450_s5  ;;  %s452_s8 = spop %451 }
 0x10d   :  { %s257_s9 = smul.f32 0.125, %s452_s8  ;;  %s454_s11 = spop %453 }
 0x10e   :  { %s258_s10 = smul.f32 %s254_s7, %s251_s4  ;;  %s273_s18 = ssub.f32 %s251_s4, %s254_s7 }
 0x10f   :  { %s261_s12 = smul.f32 %s260_s6, %s251_s4  ;;  %s456_s17 = spop %455 }
 0x110   :  { %s643_s13 = ssub.f32 %s257_s9, %s258_s10  ;;  %s266_s14 = smul.f32 8.0, %s254_s7 }
 0x111   :  { %s262_s15 = ssub.f32 %s454_s11, %s261_s12  ;;  %s274_s23 = smul.f32 %s273_s18, %s273_s18 }
 0x112   :  { %s267_s16 = smul.f32 %s266_s14, %s254_s7 }
 0x113   :  { %s265_s20 = smul.f32 0.14285715, %s262_s15 }
 0x114   :  { %s268_s19 = ssub.f32 %s456_s17, %s267_s16  ;;  %s277_s26 = smul.f32 2.0, %s643_s13 }
 0x116   :  { %s271_s21 = smul.f32 0.14285715, %s268_s19 }
 0x118   :  { %s272_s22 = sadd.f32 %s271_s21, %s265_s20 }
 0x11a   :  { %s275_s24 = sadd.f32 %s274_s23, %s272_s22 }
 0x11c   :  { %s276_s25 = sadd.f32 1e-08, %s275_s24 }
 0x11e   :  { %v278_v35 = vstv %s276_s25 }
 0x11f   :  { %486 = vrcp.f32 %v278_v35 }
 0x129   :  { %v487_v50 = vpop.eup %486 }
 0x12a   :  { %457 = vpush %v487_v50 }
 0x12b   :  { %459 = vpush %v293_v51 }
 0x12c   :  { %461 = vpush %v303_v52 }
 0x12d   :  { %463 = vpush %v313_v54 }
 0x12e   :  { %465 = vpush %v323_v53 }
 0x12f   :  { %467 = vpush %v333_v55 }
 0x15b   :  { %s458_s27 = spop %457 }
 0x15c   :  { %s281_s28 = smul.f32 %s458_s27, %s277_s26  ;;  %s460_s29 = spop %459 }
 0x15d   :  { %s337_s30 = smul.f32 0.125, %s460_s29  ;;  %s462_s0 = spop %461 }
 0x15e   :  { %s282_s3 = ssub.f32 1.0, %s281_s28  ;;  %s340_s1 = smul.f32 0.125, %s462_s0 }
 0x15f   :  { %s464_s4 = spop %463  ;;  %s346_s5 = smul.f32 8.0, %s337_s30 }
 0x160   :  { %284 = sst [smem:[#allocation8]] %s282_s3  ;;  %s343_s6 = smul.f32 0.125, %s464_s4 }
 0x161   :  { %s344_s7 = smul.f32 %s340_s1, %s337_s30  ;;  %s466_s8 = spop %465 }
 0x162   :  { %s347_s9 = smul.f32 %s346_s5, %s337_s30  ;;  %s468_s14 = spop %467 }
 0x163   :  { %s646_s10 = ssub.f32 %s343_s6, %s344_s7  ;;  %s352_s11 = smul.f32 8.0, %s340_s1 }
 0x164   :  { %s348_s12 = ssub.f32 %s466_s8, %s347_s9  ;;  %s534_s7 = scalar_lea.hbm %s663_s2, 16 }
 0x165   :  { %s353_s13 = smul.f32 %s352_s11, %s340_s1  ;;  %s359_s15 = ssub.f32 %s337_s30, %s340_s1 }
 0x166   :  { %s351_s16 = smul.f32 0.14285715, %s348_s12  ;;  %p535_p2 = scmp.ne.s32.totalorder %s663_s2, %s534_s7 }
 0x167   :  { %s354_s17 = ssub.f32 %s468_s14, %s353_s13  ;;  %s360_s20 = smul.f32 %s359_s15, %s359_s15 }
 0x168   :  { %s363_s23 = smul.f32 2.0, %s646_s10  ;;  %p538_p3 = scmp.lt.u32.totalorder %s534_s7, %s663_s2 }
 0x169   :  { %s357_s18 = smul.f32 0.14285715, %s354_s17 }
 0x16a   :  { %p540_p4 = pnand %p538_p3, %p535_p2 }
 0x16b   :  { %s358_s19 = sadd.f32 %s357_s18, %s351_s16 }
 0x16d   :  { %s361_s21 = sadd.f32 %s360_s20, %s358_s19 }
 0x16f   :  { %s362_s22 = sadd.f32 1e-08, %s361_s21 }
 0x171   :  { %v364_v5 = vstv %s362_s22 }
 0x172   :  { %488 = vrcp.f32 %v364_v5 }
 0x17c   :  { %v489_v17 = vpop.eup %488 }
 0x17d   :  { %469 = vpush %v489_v17 }
 0x17e   :  { %471 = vpush %v379_v18 }
 0x17f   :  { %473 = vpush %v394_v19 }
 0x180   :  { %475 = vpush %v409_v20 }
 0x181   :  { %477 = vpush %v424_v21 }
 0x1ae   :  { %s470_s24 = spop %469 }
 0x1af   :  { %s367_s25 = smul.f32 %s470_s24, %s363_s23  ;;  %s472_s26 = spop %471 }
 0x1b0   :  { %s383_s27 = smul.f32 0.03125, %s472_s26  ;;  %s474_s28 = spop %473 }
 0x1b1   :  { %s368_s29 = ssub.f32 1.0, %s367_s25  ;;  %s398_s30 = smul.f32 0.041666668, %s474_s28 }
 0x1b2   :  { %385 = sst [smem:[#allocation8 + $0x2]] %s383_s27  ;;  %s476_s0 = spop %475 }
 0x1b3   :  { %370 = sst [smem:[#allocation8 + $0x1]] %s368_s29  ;;  %s413_s3 = smul.f32 0.03125, %s476_s0 }
 0x1b4   :  { %400 = sst [smem:[#allocation8 + $0x3]] %s398_s30  ;;  %s478_s1 = spop %477 }
 0x1b5   :  { %415 = sst [smem:[#allocation8 + $0x4]] %s413_s3  ;;  %s428_s4 = smul.f32 0.025, %s478_s1 }
 0x1b7   :  { %430 = sst [smem:[#allocation8 + $0x5]] %s428_s4 }
 0x1b8   :  { %543 = shalt.err (!%p540_p4)
}
 0x1b9   :  { %s552_s12 = smov [#allocation8]  }
 0x1ba   :  { %438 = dma.smem_to_hbm %s552_s12, 16, %s663_s2, [#allocation5]  }
 0x1bb   :  { %548 = dma.done.wait [#allocation5], 16  }
 0x1bc   :  { %549 = vsyncadd [#allocation5], 4294967280 }
 0x1bd   :  { %442 = sfence }
 0x1be   :  { %443 = vsyncpa [#allocation4], 1 }
 0x1bf   :  { %444 = vsyncpa [#allocation7], 1 }
 0x1c0   :  { %445 = vsyncpa [#allocation5], 1 }

</bundles_post_ra>
